<compile_context>
chip_gen: v6e
topology: v6e:2x2x1
jax: 0.10.0
libtpu: 0.0.40
codegen_flags: <defaults>
</compile_context>

<pallas_src>
import functools

import jax
import jax.numpy as jnp
from jax.experimental import pallas as pl
from jax.experimental.pallas import tpu as pltpu

LANE = 128  # lane width / padded output head width


def _round_up(x, m):
    return (x + m - 1) // m * m


def qfunction_kernel(x_ref, w1_ref, b1_ref, w2_ref, b2_ref, w3_ref, b3_ref,
                     out_ref, *, compute_dtype):
    cd = compute_dtype
    x = x_ref[...].astype(cd)

    # Layer 1
    h1 = jnp.dot(x, w1_ref[...].astype(cd),
                 preferred_element_type=jnp.float32) + b1_ref[...]
    h1 = jnp.maximum(h1, 0.0)

    # Layer 2
    h2 = jnp.dot(h1.astype(cd), w2_ref[...].astype(cd),
                 preferred_element_type=jnp.float32) + b2_ref[...]
    h2 = jnp.maximum(h2, 0.0)

    # Layer 3 (output head padded to LANE columns; column 0 carries the real q)
    q = jnp.dot(h2.astype(cd), w3_ref[...].astype(cd),
                preferred_element_type=jnp.float32) + b3_ref[...]
    out_ref[...] = q.astype(out_ref.dtype)


@functools.partial(jax.jit, static_argnames=("compute_dtype", "batch_tile"))
def qfunction_forward(obs, action, params, *, compute_dtype=jnp.float32,
                      batch_tile=512):
    """obs: (B, obs_dim), action: (B, action_dim) -> (B, 1) float32."""
    w1, b1, w2, b2, w3, b3 = params
    B = obs.shape[0]
    assert action.shape[0] == B
    obs_dim, act_dim = obs.shape[1], action.shape[1]
    in_dim = obs_dim + act_dim
    hidden = w1.shape[1]

    # Fold the concat in the wrapper (XLA fuses): one K=in_dim matmul in the
    # kernel instead of two skinny ones.
    x = jnp.concatenate([obs.astype(jnp.float32),
                         action.astype(jnp.float32)], axis=1)

    # Lane-dense output head: pad (hidden, 1) -> (hidden, LANE) with zeros.
    w3p = jnp.zeros((hidden, LANE), jnp.float32).at[:, :1].set(
        w3.astype(jnp.float32))
    b3p = jnp.zeros((1, LANE), jnp.float32).at[:, :1].set(
        b3.astype(jnp.float32))

    # Batch tile: multiple of 8 sublanes; small enough for v7x's scoped VMEM.
    tb = min(_round_up(batch_tile, 8), _round_up(B, 8))
    n_tiles = pl.cdiv(B, tb)
    bp = n_tiles * tb
    if bp != B:
        x = jnp.pad(x, ((0, bp - B), (0, 0)))

    resident = lambda i: (0, 0)  # weights/biases: same block every grid step

    flops = 2 * bp * (in_dim * hidden + hidden * hidden + hidden * LANE)
    bytes_accessed = 4 * (bp * in_dim + bp * LANE
                          + in_dim * hidden + hidden * hidden + hidden * LANE
                          + 2 * hidden + LANE)

    out = pl.pallas_call(
        functools.partial(qfunction_kernel, compute_dtype=compute_dtype),
        out_shape=jax.ShapeDtypeStruct((bp, LANE), jnp.float32),
        grid=(n_tiles,),
        in_specs=[
            pl.BlockSpec((tb, in_dim), lambda i: (i, 0)),   # x tiled over batch
            pl.BlockSpec((in_dim, hidden), resident),       # W1
            pl.BlockSpec((1, hidden), resident),            # b1
            pl.BlockSpec((hidden, hidden), resident),       # W2
            pl.BlockSpec((1, hidden), resident),            # b2
            pl.BlockSpec((hidden, LANE), resident),         # W3 (padded)
            pl.BlockSpec((1, LANE), resident),              # b3 (padded)
        ],
        out_specs=pl.BlockSpec((tb, LANE), lambda i: (i, 0)),
        compiler_params=pltpu.CompilerParams(
            dimension_semantics=("parallel",)),
        cost_estimate=pl.CostEstimate(flops=flops, transcendentals=0,
                                      bytes_accessed=bytes_accessed),
    )(x, w1, b1, w2, b2, w3p, b3p)

    return out[:B, :1]


def init_params(key, obs_dim, action_dim, hidden_dim):
    """Deterministic synthetic params. Weights stored as (in, out)."""
    ks = jax.random.split(key, 6)
    in_dim = obs_dim + action_dim

    def lin_init(kw, kb, fan_in, fan_out):
        bound = 1.0 / jnp.sqrt(fan_in)
        w = jax.random.uniform(kw, (fan_in, fan_out), jnp.float32, -bound, bound)
        b = jax.random.uniform(kb, (1, fan_out), jnp.float32, -bound, bound)
        return w, b

    w1, b1 = lin_init(ks[0], ks[1], in_dim, hidden_dim)
    w2, b2 = lin_init(ks[2], ks[3], hidden_dim, hidden_dim)
    w3, b3 = lin_init(ks[4], ks[5], hidden_dim, 1)
    return (w1, b1, w2, b2, w3, b3)


def reference_forward(obs, action, params):
    w1, b1, w2, b2, w3, b3 = params
    x = jnp.concatenate([obs, action], axis=1)
    h1 = jnp.maximum(x @ w1 + b1, 0.0)
    h2 = jnp.maximum(h1 @ w2 + b2, 0.0)
    return h2 @ w3 + b3


if __name__ == "__main__":
    B, OBS_DIM, ACTION_DIM, HIDDEN_DIM = 8, 32, 8, 32

    key = jax.random.PRNGKey(0)
    k_obs, k_act, k_par = jax.random.split(key, 3)

    obs = jax.random.normal(k_obs, (B, OBS_DIM), jnp.float32)
    action = jax.random.normal(k_act, (B, ACTION_DIM), jnp.float32)
    params = init_params(k_par, OBS_DIM, ACTION_DIM, HIDDEN_DIM)

    q_ref = reference_forward(obs, action, params)

    # Exact-semantics path: f32 MXU inputs.
    q = jax.block_until_ready(
        qfunction_forward(obs, action, params, compute_dtype=jnp.float32))
    assert q.shape == (B, 1)
    assert jnp.allclose(q, q_ref, atol=1e-5, rtol=1e-5), "f32 mismatch vs ref"

    # bf16 MXU inputs with f32 accumulation (looser tolerance, per review).
    q_bf16 = jax.block_until_ready(
        qfunction_forward(obs, action, params, compute_dtype=jnp.bfloat16))
    assert q_bf16.shape == (B, 1)
    assert jnp.allclose(q_bf16, q_ref, atol=5e-2, rtol=5e-2), "bf16 mismatch"

    # Multi-tile + padded-batch path (exercises the batch grid and padding).
    B2 = 20
    k2o, k2a = jax.random.split(jax.random.PRNGKey(1))
    obs2 = jax.random.normal(k2o, (B2, OBS_DIM), jnp.float32)
    act2 = jax.random.normal(k2a, (B2, ACTION_DIM), jnp.float32)
    q2 = jax.block_until_ready(
        qfunction_forward(obs2, act2, params, compute_dtype=jnp.float32,
                          batch_tile=8))
    assert q2.shape == (B2, 1)
    assert jnp.allclose(q2, reference_forward(obs2, act2, params),
                        atol=1e-5, rtol=1e-5), "gridded path mismatch"

    # TODO(synk): SAC twin-critic fusion (stacking Q1/Q2 weights into one kernel)
    # is a model-level change and is left out of this single-QFunction port.

    print("KERNEL_OK")
</pallas_src>

<mosaic_0001>
module attributes {stable_mosaic.version = 11 : i64} {
  func.func @qfunction_kernel(%arg0: i32, %arg1: memref<8x40xf32, #tpu.memory_space<vmem>>, %arg2: memref<40x32xf32, #tpu.memory_space<vmem>>, %arg3: memref<1x32xf32, #tpu.memory_space<vmem>>, %arg4: memref<32x32xf32, #tpu.memory_space<vmem>>, %arg5: memref<1x32xf32, #tpu.memory_space<vmem>>, %arg6: memref<32x128xf32, #tpu.memory_space<vmem>>, %arg7: memref<1x128xf32, #tpu.memory_space<vmem>>, %arg8: memref<8x128xf32, #tpu.memory_space<vmem>>) attributes {dimension_semantics = [#tpu.dimension_semantics<parallel>], iteration_bounds = array<i64: 1>, scalar_prefetch = 0 : i64, scratch_operands = 0 : i64, tpu.core_type = #tpu.core_type<tc>, window_params = [{transform_indices = @transform_0, window_bounds = array<i64: 8, 40>}, {pipeline_mode = #tpu.pipeline_mode<synchronous>, transform_indices = @transform_1, window_bounds = array<i64: 40, 32>}, {pipeline_mode = #tpu.pipeline_mode<synchronous>, transform_indices = @transform_2, window_bounds = array<i64: 1, 32>}, {pipeline_mode = #tpu.pipeline_mode<synchronous>, transform_indices = @transform_3, window_bounds = array<i64: 32, 32>}, {pipeline_mode = #tpu.pipeline_mode<synchronous>, transform_indices = @transform_4, window_bounds = array<i64: 1, 32>}, {pipeline_mode = #tpu.pipeline_mode<synchronous>, transform_indices = @transform_5, window_bounds = array<i64: 32, 128>}, {pipeline_mode = #tpu.pipeline_mode<synchronous>, transform_indices = @transform_6, window_bounds = array<i64: 1, 128>}, {transform_indices = @transform_7, window_bounds = array<i64: 8, 128>}]} {
    %c0 = arith.constant 0 : index
    %c0_0 = arith.constant 0 : index
    %0 = vector.load %arg1[%c0, %c0_0] : memref<8x40xf32, #tpu.memory_space<vmem>>, vector<8x40xf32>
    %c0_1 = arith.constant 0 : index
    %c0_2 = arith.constant 0 : index
    %1 = vector.load %arg2[%c0_1, %c0_2] : memref<40x32xf32, #tpu.memory_space<vmem>>, vector<40x32xf32>
    %cst = arith.constant dense<0.000000e+00> : vector<8x32xf32>
    %2 = tpu.matmul %0, %1, %cst {dimension_numbers = #tpu.dot_dimension_numbers<[1], [0], [0], [1], [0, 0, 1, 1], [], []>} : vector<8x40xf32>, vector<40x32xf32>, vector<8x32xf32> -> vector<8x32xf32>
    %c0_3 = arith.constant 0 : index
    %c0_4 = arith.constant 0 : index
    %3 = vector.load %arg3[%c0_3, %c0_4] : memref<1x32xf32, #tpu.memory_space<vmem>>, vector<1x32xf32>
    %4 = vector.broadcast %3 : vector<1x32xf32> to vector<8x32xf32>
    %5 = arith.addf %2, %4 : vector<8x32xf32>
    %cst_5 = arith.constant 0.000000e+00 : f32
    %6 = vector.broadcast %cst_5 : f32 to vector<8x32xf32>
    %7 = arith.maximumf %5, %6 : vector<8x32xf32>
    %c0_6 = arith.constant 0 : index
    %c0_7 = arith.constant 0 : index
    %8 = vector.load %arg4[%c0_6, %c0_7] : memref<32x32xf32, #tpu.memory_space<vmem>>, vector<32x32xf32>
    %cst_8 = arith.constant dense<0.000000e+00> : vector<8x32xf32>
    %9 = tpu.matmul %7, %8, %cst_8 {dimension_numbers = #tpu.dot_dimension_numbers<[1], [0], [0], [1], [0, 0, 1, 1], [], []>} : vector<8x32xf32>, vector<32x32xf32>, vector<8x32xf32> -> vector<8x32xf32>
    %c0_9 = arith.constant 0 : index
    %c0_10 = arith.constant 0 : index
    %10 = vector.load %arg5[%c0_9, %c0_10] : memref<1x32xf32, #tpu.memory_space<vmem>>, vector<1x32xf32>
    %11 = vector.broadcast %10 : vector<1x32xf32> to vector<8x32xf32>
    %12 = arith.addf %9, %11 : vector<8x32xf32>
    %cst_11 = arith.constant 0.000000e+00 : f32
    %13 = vector.broadcast %cst_11 : f32 to vector<8x32xf32>
    %14 = arith.maximumf %12, %13 : vector<8x32xf32>
    %c0_12 = arith.constant 0 : index
    %c0_13 = arith.constant 0 : index
    %15 = vector.load %arg6[%c0_12, %c0_13] : memref<32x128xf32, #tpu.memory_space<vmem>>, vector<32x128xf32>
    %cst_14 = arith.constant dense<0.000000e+00> : vector<8x128xf32>
    %16 = tpu.matmul %14, %15, %cst_14 {dimension_numbers = #tpu.dot_dimension_numbers<[1], [0], [0], [1], [0, 0, 1, 1], [], []>} : vector<8x32xf32>, vector<32x128xf32>, vector<8x128xf32> -> vector<8x128xf32>
    %c0_15 = arith.constant 0 : index
    %c0_16 = arith.constant 0 : index
    %17 = vector.load %arg7[%c0_15, %c0_16] : memref<1x128xf32, #tpu.memory_space<vmem>>, vector<1x128xf32>
    %18 = vector.broadcast %17 : vector<1x128xf32> to vector<8x128xf32>
    %19 = arith.addf %16, %18 : vector<8x128xf32>
    %c0_17 = arith.constant 0 : index
    %c0_18 = arith.constant 0 : index
    %20 = vector.load %arg8[%c0_17, %c0_18] : memref<8x128xf32, #tpu.memory_space<vmem>>, vector<8x128xf32>
    tpu.vector_store %arg8[%c0_17, %c0_18], %19 {strides = array<i32>} : memref<8x128xf32, #tpu.memory_space<vmem>>, vector<8x128xf32>,
    return
  }
  func.func @transform_0(%arg0: i32) -> (i32, i32) {
    %c0_i32 = arith.constant 0 : i32
    %c0_i32_0 = arith.constant 0 : i32
    return %arg0, %c0_i32 : i32, i32
  }
  func.func @transform_1(%arg0: i32) -> (i32, i32) {
    %c0_i32 = arith.constant 0 : i32
    %c0_i32_0 = arith.constant 0 : i32
    %c0_i32_1 = arith.constant 0 : i32
    return %c0_i32, %c0_i32_0 : i32, i32
  }
  func.func @transform_2(%arg0: i32) -> (i32, i32) {
    %c0_i32 = arith.constant 0 : i32
    %c0_i32_0 = arith.constant 0 : i32
    %c0_i32_1 = arith.constant 0 : i32
    return %c0_i32, %c0_i32_0 : i32, i32
  }
  func.func @transform_3(%arg0: i32) -> (i32, i32) {
    %c0_i32 = arith.constant 0 : i32
    %c0_i32_0 = arith.constant 0 : i32
    %c0_i32_1 = arith.constant 0 : i32
    return %c0_i32, %c0_i32_0 : i32, i32
  }
  func.func @transform_4(%arg0: i32) -> (i32, i32) {
    %c0_i32 = arith.constant 0 : i32
    %c0_i32_0 = arith.constant 0 : i32
    %c0_i32_1 = arith.constant 0 : i32
    return %c0_i32, %c0_i32_0 : i32, i32
  }
  func.func @transform_5(%arg0: i32) -> (i32, i32) {
    %c0_i32 = arith.constant 0 : i32
    %c0_i32_0 = arith.constant 0 : i32
    %c0_i32_1 = arith.constant 0 : i32
    return %c0_i32, %c0_i32_0 : i32, i32
  }
  func.func @transform_6(%arg0: i32) -> (i32, i32) {
    %c0_i32 = arith.constant 0 : i32
    %c0_i32_0 = arith.constant 0 : i32
    %c0_i32_1 = arith.constant 0 : i32
    return %c0_i32, %c0_i32_0 : i32, i32
  }
  func.func @transform_7(%arg0: i32) -> (i32, i32) {
    %c0_i32 = arith.constant 0 : i32
    %c0_i32_0 = arith.constant 0 : i32
    return %arg0, %c0_i32 : i32, i32
  }
}

</mosaic_0001>

<bundles_post_ra>
// kernel: qfunction_forward.1
= control target key start
LH: loop header
LB: loop body
LE: loop exit
PB: predicated region body
PF: predicated region fallthrough
CT: control target
= control target key end

     0   :  { %v348_v0 = vmov 0.0   ;;  %vm349_vm0 = vmmov 0   ;;  %vm39_vm1 = vcmask 326656   ;;  %vm125_vm2 = vcmask 261120   ;;  %s449_s1 = inlined_call_operand.vmem [shape: f32[40,32], index: 1, kind: input, shape index: {}]   ;;  %s450_s3 = inlined_call_operand.vmem [shape: f32[32,32], index: 3, kind: input, shape index: {}]   ;;  %s451_s0 = inlined_call_operand.vmem [shape: f32[8,40], index: 0, kind: input, shape index: {}]   ;;  %s452_s2 = inlined_call_operand.vmem [shape: f32[1,32], index: 2, kind: input, shape index: {}]   ;;  %s453_s5 = inlined_call_operand.vmem [shape: f32[32,128], index: 5, kind: input, shape index: {}]   ;;  %s454_s4 = inlined_call_operand.vmem [shape: f32[1,32], index: 4, kind: input, shape index: {}]   ;;  %s455_s6 = inlined_call_operand.vmem [shape: f32[1,128], index: 6, kind: input, shape index: {}]   ;;  %s456_s7 = inlined_call_operand.vmem [shape: f32[8,128], index: 7, kind: output, shape index: {}]  }
   0x1   :  { %311 = vmatprep.subr.mxu0 %v348_v0  ;;  %v31_v1 = vld [vmem:[%s449_s1 + $0x20] sm:$0xff]  ;;  %v30_v2 = vld [vmem:[%s449_s1 + $0x18] sm:$0xff]  ;;  %321 = vmatprep.mubr.msk.f32.mxu0 %vm349_vm0, %v348_v0  ;;  %v29_v3 = vld [vmem:[%s449_s1 + $0x10] sm:$0xff] }
   0x2   :  { %312 = vmatpush3.msra.mxu0 %v31_v1  ;;  %324 = vmatprep.subr.mxu1 %v348_v0  ;;  %v117_v4 = vld [vmem:[%s450_s3 + $0x18] sm:$0xff]  ;;  %v28_v5 = vld [vmem:[%s449_s1 + $0x8] sm:$0xff]  ;;  %v27_v6 = vld [vmem:[%s449_s1] sm:$0xff] }
   0x3   :  { %313 = vmatprep.subr.mxu0 %v348_v0  ;;  %332 = vmatprep.mubr.msk.f32.mxu1 %vm349_vm0, %v348_v0  ;;  %v26_v7 = vld [vmem:[%s451_s0] sm:$0xff]  ;;  %v116_v8 = vld [vmem:[%s450_s3 + $0x10] sm:$0xff]  ;;  %v115_v9 = vld [vmem:[%s450_s3 + $0x8] sm:$0xff] }
   0x4   :  { %314 = vmatpush3.msra.mxu0 %v30_v2  ;;  %325 = vmatpush3.msra.mxu1 %v117_v4  ;;  %v114_v10 = vld [vmem:[%s450_s3] sm:$0xff]  ;;  %v203_v16 = vld [vmem:[%s453_s5 + $0x18] sm:$0xff]  ;;  %v202_v17 = vld [vmem:[%s453_s5 + $0x10] sm:$0xff] }
   0x5   :  { %315 = vmatprep.subr.mxu0 %v348_v0  ;;  %326 = vmatprep.subr.mxu1 %v348_v0  ;;  %v289_v11 = vld [vmem:[%s452_s2] ss:$0 sm:$0xff]  ;;  %v201_v18 = vld [vmem:[%s453_s5 + $0x8] sm:$0xff] }
   0x6   :  { %316 = vmatpush3.msra.mxu0 %v29_v3  ;;  %327 = vmatpush3.msra.mxu1 %v116_v8  ;;  %v200_v19 = vld [vmem:[%s453_s5] sm:$0xff] }
   0x7   :  { %317 = vmatprep.subr.mxu0 %v348_v0  ;;  %328 = vmatprep.subr.mxu1 %v348_v0  ;;  %v291_v20 = vld [vmem:[%s454_s4] ss:$0 sm:$0xff] }
   0x8   :  { %318 = vmatpush3.msra.mxu0 %v28_v5  ;;  %329 = vmatpush3.msra.mxu1 %v115_v9  ;;  %v293_v25 = vld [vmem:[%s455_s6] ss:$0 sm:$0xff] }
   0x9   :  { %319 = vmatprep.subr.mxu0 %v348_v0  ;;  %330 = vmatprep.subr.mxu1 %v348_v0 }
   0xa   :  { %320 = vmatpush3.msra.mxu0 %v27_v6  ;;  %331 = vmatpush3.msra.mxu1 %v114_v10 }
   0xb   :  { %322 = vmatmul.mubr.msk.f32.vlgmr.msra.gmra.mxu0 %vm39_vm1, %v26_v7  ;;  %335 = vmatprep.subr.mxu1 %v348_v0 }
  0xcb   :  { %v109_v12 = vpop.f32.mrf.mxu0 }
  0xcc   :  { %v110_v13 = vadd.f32 %v289_v11, %v109_v12 }
  0xcd   :  { %v323_v14 = vpop.f32.mrf.mxu0 }
  0xce   :  { %v113_v15 = vmax.f32 %v110_v13, 0.0 }
  0xd0   :  { %333 = vmatmul.mubr.msk.f32.vlgmr.msra.gmra.mxu1 %vm125_vm2, %v113_v15 }
  0xd1   :  { %336 = vmatpush3.msra.mxu1 %v203_v16  ;;  %343 = vmatprep.mubr.msk.f32.mxu1 %vm349_vm0, %v348_v0 }
  0xd2   :  { %337 = vmatprep.subr.mxu1 %v348_v0 }
  0xd3   :  { %338 = vmatpush3.msra.mxu1 %v202_v17 }
  0xd4   :  { %339 = vmatprep.subr.mxu1 %v348_v0 }
  0xd5   :  { %340 = vmatpush3.msra.mxu1 %v201_v18 }
  0xd6   :  { %341 = vmatprep.subr.mxu1 %v348_v0 }
  0xd7   :  { %342 = vmatpush3.msra.mxu1 %v200_v19 }
 0x190   :  { %v195_v21 = vpop.f32.mrf.mxu1 }
 0x191   :  { %v196_v22 = vadd.f32 %v291_v20, %v195_v21 }
 0x192   :  { %v334_v23 = vpop.f32.mrf.mxu1 }
 0x193   :  { %v199_v24 = vmax.f32 %v196_v22, 0.0 }
 0x195   :  { %344 = vmatmul.mubr.msk.f32.vlgmr.msra.gmra.mxu1 %vm125_vm2, %v199_v24 }
 0x255   :  { %v280_v26 = vpop.f32.mrf.mxu1 }
 0x256   :  { %v281_v27 = vadd.f32 %v293_v25, %v280_v26 }
 0x257   :  { %v345_v28 = vpop.f32.mrf.mxu1 }
 0x258   :  { %284 = vst [vmem:[%s456_s7] sm:$0xff] %v281_v27 }

</bundles_post_ra>
